<compile_context>
chip_gen: v5e
topology: v5e:2x2
jax: 0.10.0
libtpu: 0.0.40
codegen_flags: <defaults>
</compile_context>

<pallas_src>
import jax
import jax.numpy as jnp
from jax.experimental import pallas as pl
from jax.experimental.pallas import tpu as pltpu

LANE = 128
SUBLANE = 8
_SMALL_F_MAX = 8   # below this, layer-1 runs as unrolled VPU FMAs, not MXU


def _round_up(x, m):
    return (x + m - 1) // m * m


def _vmem_tile_bytes(rows, cols, itemsize=4):
    """f32 VMEM footprint of a (rows, cols) buffer under (8, 128) tiling."""
    return _round_up(rows, SUBLANE) * _round_up(cols, LANE) * itemsize


def mlp_kernel(xT_ref, w1_ref, b1_ref, w2_ref, b2_ref, oT_ref):
    # xT_ref: (F, T)    w1_ref: (H, F)   b1_ref: (H, 1)
    # w2_ref: (O, H)    b2_ref: (O, 1)   oT_ref: (O, T)
    n_feat = xT_ref.shape[0]

    if n_feat <= _SMALL_F_MAX:
        # Degenerate contraction (n_feature=2): a K=2 matmul wastes the MXU,
        # so layer 1 is F unrolled VPU outer-product FMAs producing h^T.
        acc = w1_ref[:, 0:1] * xT_ref[0:1, :] + b1_ref[...]
        for f in range(1, n_feat):
            acc = acc + w1_ref[:, f:f + 1] * xT_ref[f:f + 1, :]
    else:
        acc = jnp.dot(w1_ref[...], xT_ref[...],
                      preferred_element_type=jnp.float32) + b1_ref[...]
    hT = jnp.maximum(acc, 0.0)                       # (H, T)

    # Layer 2: only the O real logit rows (M=O, K=H, N=T) -> no dead-column
    # MXU work, and a lane-dense (O, T) output store.
    oT_ref[...] = (
        jnp.dot(w2_ref[...], hT, preferred_element_type=jnp.float32)
        + b2_ref[...]
    )


def prepare_params(w1, b1, w2, b2):
    """One-time parameter prep (kept OFF the per-forward path).

    PyTorch Linear layout in: w1 (H, F), b1 (H,), w2 (O, H), b2 (O,).
    Hidden dim is padded only to a sublane multiple; padded rows have zero
    weight/bias so relu(0)=0 and they contribute nothing through layer 2.
    """
    h, f = w1.shape
    o = w2.shape[0]
    h_pad = _round_up(h, SUBLANE)

    w1p = jnp.zeros((h_pad, f), jnp.float32).at[:h, :].set(w1)
    b1p = jnp.zeros((h_pad, 1), jnp.float32).at[:h, 0].set(b1)
    w2p = jnp.zeros((o, h_pad), jnp.float32).at[:, :h].set(w2)
    b2p = b2.reshape(o, 1).astype(jnp.float32)
    return w1p, b1p, w2p, b2p


def net_forward(x, w1p, b1p, w2p, b2p, *, tile_n=8192, core_parallel=False):
    """Pallas forward: relu(x @ W1^T + b1) @ W2^T + b2. Returns (N, O)."""
    n, f = x.shape
    h_pad = w1p.shape[0]
    o = w2p.shape[0]

    # Batch tiling: lane-aligned tiles; small batches collapse to one tile.
    tile = min(_round_up(tile_n, LANE), _round_up(n, LANE))
    n_pad = _round_up(n, tile)
    steps = n_pad // tile

    # Feature-major relayout (required for lane-dense loads/stores); batch
    # padding is fused into this single pass -- no extra HBM copy of x.
    xT = x.T.astype(jnp.float32)
    if n_pad != n:
        xT = jnp.zeros((f, n_pad), jnp.float32).at[:, :n].set(xT)

    # Explicit per-step VMEM footprint: double-buffered x/out tiles, the h^T
    # intermediate plus elementwise temps, resident params, slack.
    footprint = (
        2 * _vmem_tile_bytes(f, tile)
        + 2 * _vmem_tile_bytes(o, tile)
        + 4 * _vmem_tile_bytes(h_pad, tile)
        + _vmem_tile_bytes(h_pad, f) + _vmem_tile_bytes(h_pad, 1)
        + _vmem_tile_bytes(o, h_pad) + _vmem_tile_bytes(o, 1)
        + (2 << 20)
    )
    vmem_limit = int(min(max(footprint, 8 << 20), 48 << 20))  # v7x-safe cap

    flops = 2 * n_pad * f * h_pad + 2 * n_pad * h_pad * o
    bytes_accessed = 4 * (
        f * n_pad + h_pad * f + h_pad + o * h_pad + o + o * n_pad)

    # On v7x set core_parallel=True (with >=2 grid steps) so both TensorCores
    # split the batch axis; plain "parallel" is the safe single-TC default.
    dim_sem = (pltpu.CORE_PARALLEL,) if core_parallel else ("parallel",)

    outT = pl.pallas_call(
        mlp_kernel,
        out_shape=jax.ShapeDtypeStruct((o, n_pad), jnp.float32),
        grid=(steps,),
        in_specs=[
            pl.BlockSpec((f, tile), lambda i: (0, i)),        # x^T tile (pipelined)
            pl.BlockSpec((h_pad, f), lambda i: (0, 0)),       # W1  (resident)
            pl.BlockSpec((h_pad, 1), lambda i: (0, 0)),       # b1  (resident)
            pl.BlockSpec((o, h_pad), lambda i: (0, 0)),       # W2  (resident)
            pl.BlockSpec((o, 1), lambda i: (0, 0)),           # b2  (resident)
        ],
        out_specs=pl.BlockSpec((o, tile), lambda i: (0, i)),  # y^T tile
        compiler_params=pltpu.CompilerParams(
            dimension_semantics=dim_sem,
            vmem_limit_bytes=vmem_limit,
        ),
        cost_estimate=pl.CostEstimate(
            flops=flops, transcendentals=0, bytes_accessed=bytes_accessed),
    )(xT, w1p, b1p, w2p, b2p)

    # Back to the module's (N, O) orientation; strip batch padding.
    return outT[:, :n].T


def net_ref(x, w1, b1, w2, b2):
    """Pure-JAX reference (mirrors PyTorch semantics exactly)."""
    h = jnp.maximum(
        jnp.dot(x, w1.T, precision=jax.lax.Precision.HIGHEST) + b1, 0.0)
    return jnp.dot(h, w2.T, precision=jax.lax.Precision.HIGHEST) + b2


if __name__ == "__main__":
    # Net(n_feature=2, n_hidden=32, n_output=2); data like the script's two
    # Gaussian clusters (100 points around +2, 100 around -2) -> batch=200.
    n_feature, n_hidden, n_output = 2, 32, 2
    n_per_cluster = 100

    key = jax.random.PRNGKey(0)
    kx0, kx1, k1, k2, k3, k4 = jax.random.split(key, 6)

    # Parameters in PyTorch Linear layout: (out, in) weights, (out,) biases.
    w1 = jax.random.normal(k1, (n_hidden, n_feature), jnp.float32) * 0.1
    b1 = jax.random.normal(k2, (n_hidden,), jnp.float32) * 0.1
    w2 = jax.random.normal(k3, (n_output, n_hidden), jnp.float32) * 0.1
    b2 = jax.random.normal(k4, (n_output,), jnp.float32) * 0.1

    x0 = jax.random.normal(kx0, (n_per_cluster, n_feature), jnp.float32) + 2.0
    x1 = jax.random.normal(kx1, (n_per_cluster, n_feature), jnp.float32) - 2.0
    x = jnp.concatenate([x0, x1], axis=0)            # (200, 2)

    # One-time parameter prep (padding + layout), off the hot path.
    w1p, b1p, w2p, b2p = prepare_params(w1, b1, w2, b2)

    ref = net_ref(x, w1, b1, w2, b2)

    # Default path: the small demo batch collapses to a single 256-wide tile.
    out = jax.block_until_ready(net_forward(x, w1p, b1p, w2p, b2p))
    assert out.shape == (2 * n_per_cluster, n_output)
    assert jnp.allclose(out, ref, atol=1e-4, rtol=1e-4)

    # Small-tile path: exercises the multi-step (grid=2) pipelined case.
    out2 = jax.block_until_ready(
        net_forward(x, w1p, b1p, w2p, b2p, tile_n=128))
    assert jnp.allclose(out2, ref, atol=1e-4, rtol=1e-4)

    print("KERNEL_OK")
</pallas_src>

<mosaic_0001>
module attributes {stable_mosaic.version = 11 : i64} {
  func.func @mlp_kernel(%arg0: i32, %arg1: memref<2x256xf32, #tpu.memory_space<vmem>>, %arg2: memref<32x2xf32, #tpu.memory_space<vmem>>, %arg3: memref<32x1xf32, #tpu.memory_space<vmem>>, %arg4: memref<2x32xf32, #tpu.memory_space<vmem>>, %arg5: memref<2x1xf32, #tpu.memory_space<vmem>>, %arg6: memref<2x256xf32, #tpu.memory_space<vmem>>) attributes {dimension_semantics = [#tpu.dimension_semantics<parallel>], iteration_bounds = array<i64: 1>, scalar_prefetch = 0 : i64, scratch_operands = 0 : i64, tpu.core_type = #tpu.core_type<tc>, window_params = [{transform_indices = @transform_0, window_bounds = array<i64: 2, 256>}, {pipeline_mode = #tpu.pipeline_mode<synchronous>, transform_indices = @transform_1, window_bounds = array<i64: 32, 2>}, {pipeline_mode = #tpu.pipeline_mode<synchronous>, transform_indices = @transform_2, window_bounds = array<i64: 32, 1>}, {pipeline_mode = #tpu.pipeline_mode<synchronous>, transform_indices = @transform_3, window_bounds = array<i64: 2, 32>}, {pipeline_mode = #tpu.pipeline_mode<synchronous>, transform_indices = @transform_4, window_bounds = array<i64: 2, 1>}, {transform_indices = @transform_5, window_bounds = array<i64: 2, 256>}]} {
    %c0 = arith.constant 0 : index
    %c0_0 = arith.constant 0 : index
    %0 = vector.load %arg2[%c0, %c0_0] : memref<32x2xf32, #tpu.memory_space<vmem>>, vector<32x1xf32>
    %c0_1 = arith.constant 0 : index
    %c0_2 = arith.constant 0 : index
    %1 = vector.load %arg1[%c0_1, %c0_2] : memref<2x256xf32, #tpu.memory_space<vmem>>, vector<1x256xf32>
    %2 = vector.broadcast %0 : vector<32x1xf32> to vector<32x256xf32>
    %3 = vector.broadcast %1 : vector<1x256xf32> to vector<32x256xf32>
    %4 = arith.mulf %2, %3 : vector<32x256xf32>
    %c0_3 = arith.constant 0 : index
    %c0_4 = arith.constant 0 : index
    %5 = vector.load %arg3[%c0_3, %c0_4] : memref<32x1xf32, #tpu.memory_space<vmem>>, vector<32x1xf32>
    %6 = vector.broadcast %5 : vector<32x1xf32> to vector<32x256xf32>
    %7 = arith.addf %4, %6 : vector<32x256xf32>
    %c0_5 = arith.constant 0 : index
    %c1 = arith.constant 1 : index
    %8 = vector.load %arg2[%c0_5, %c1] : memref<32x2xf32, #tpu.memory_space<vmem>>, vector<32x1xf32>
    %c1_6 = arith.constant 1 : index
    %c0_7 = arith.constant 0 : index
    %9 = vector.load %arg1[%c1_6, %c0_7] : memref<2x256xf32, #tpu.memory_space<vmem>>, vector<1x256xf32>
    %10 = vector.broadcast %8 : vector<32x1xf32> to vector<32x256xf32>
    %11 = vector.broadcast %9 : vector<1x256xf32> to vector<32x256xf32>
    %12 = arith.mulf %10, %11 : vector<32x256xf32>
    %13 = arith.addf %7, %12 : vector<32x256xf32>
    %cst = arith.constant 0.000000e+00 : f32
    %14 = vector.broadcast %cst : f32 to vector<32x256xf32>
    %15 = arith.maximumf %13, %14 : vector<32x256xf32>
    %c0_8 = arith.constant 0 : index
    %c0_9 = arith.constant 0 : index
    %16 = vector.load %arg4[%c0_8, %c0_9] : memref<2x32xf32, #tpu.memory_space<vmem>>, vector<2x32xf32>
    %cst_10 = arith.constant dense<0.000000e+00> : vector<2x256xf32>
    %17 = tpu.matmul %16, %15, %cst_10 {dimension_numbers = #tpu.dot_dimension_numbers<[1], [0], [0], [1], [0, 0, 1, 1], [], []>} : vector<2x32xf32>, vector<32x256xf32>, vector<2x256xf32> -> vector<2x256xf32>
    %c0_11 = arith.constant 0 : index
    %c0_12 = arith.constant 0 : index
    %18 = vector.load %arg5[%c0_11, %c0_12] : memref<2x1xf32, #tpu.memory_space<vmem>>, vector<2x1xf32>
    %19 = vector.broadcast %18 : vector<2x1xf32> to vector<2x256xf32>
    %20 = arith.addf %17, %19 : vector<2x256xf32>
    %c0_13 = arith.constant 0 : index
    %c0_14 = arith.constant 0 : index
    %21 = vector.load %arg6[%c0_13, %c0_14] : memref<2x256xf32, #tpu.memory_space<vmem>>, vector<2x256xf32>
    tpu.vector_store %arg6[%c0_13, %c0_14], %20 {strides = array<i32>} : memref<2x256xf32, #tpu.memory_space<vmem>>, vector<2x256xf32>,
    return
  }
  func.func @transform_0(%arg0: i32) -> (i32, i32) {
    %c0_i32 = arith.constant 0 : i32
    %c0_i32_0 = arith.constant 0 : i32
    return %c0_i32, %arg0 : i32, i32
  }
  func.func @transform_1(%arg0: i32) -> (i32, i32) {
    %c0_i32 = arith.constant 0 : i32
    %c0_i32_0 = arith.constant 0 : i32
    %c0_i32_1 = arith.constant 0 : i32
    return %c0_i32, %c0_i32_0 : i32, i32
  }
  func.func @transform_2(%arg0: i32) -> (i32, i32) {
    %c0_i32 = arith.constant 0 : i32
    %c0_i32_0 = arith.constant 0 : i32
    %c0_i32_1 = arith.constant 0 : i32
    return %c0_i32, %c0_i32_0 : i32, i32
  }
  func.func @transform_3(%arg0: i32) -> (i32, i32) {
    %c0_i32 = arith.constant 0 : i32
    %c0_i32_0 = arith.constant 0 : i32
    %c0_i32_1 = arith.constant 0 : i32
    return %c0_i32, %c0_i32_0 : i32, i32
  }
  func.func @transform_4(%arg0: i32) -> (i32, i32) {
    %c0_i32 = arith.constant 0 : i32
    %c0_i32_0 = arith.constant 0 : i32
    %c0_i32_1 = arith.constant 0 : i32
    return %c0_i32, %c0_i32_0 : i32, i32
  }
  func.func @transform_5(%arg0: i32) -> (i32, i32) {
    %c0_i32 = arith.constant 0 : i32
    %c0_i32_0 = arith.constant 0 : i32
    return %c0_i32, %arg0 : i32, i32
  }
}

</mosaic_0001>

<bundles_post_ra>
// kernel: tpu_custom_call.1
= control target key start
LH: loop header
LB: loop body
LE: loop exit
PB: predicated region body
PF: predicated region fallthrough
CT: control target
= control target key end

     0   :  { %v253_v2 = vmov 0   ;;  %s325_s0 = inlined_call_operand.vmem [shape: f32[2,256], index: 0, kind: input, shape index: {}]   ;;  %s326_s1 = inlined_call_operand.vmem [shape: f32[32,2], index: 1, kind: input, shape index: {}]   ;;  %s327_s2 = inlined_call_operand.vmem [shape: f32[32,1], index: 2, kind: input, shape index: {}]   ;;  %s328_s3 = inlined_call_operand.vmem [shape: f32[2,32], index: 3, kind: input, shape index: {}]   ;;  %s329_s4 = inlined_call_operand.vmem [shape: f32[2,1], index: 4, kind: input, shape index: {}]   ;;  %s330_s5 = inlined_call_operand.hbm [shape: f32[2,256], index: 5, kind: output, shape index: {}]  }
   0x1   :  { %v62_v0 = vld [vmem:[%s327_s2 + $0x18] sm:$0xff]  ;;  %219 = vset.pattern.permute.xlu1 %v253_v2  ;;  %218 = vset.pattern.permute.xlu0 %v253_v2  ;;  %v22_v3 = vld [vmem:[%s326_s1 + $0x8] sm:$0xff] }
   0x2   :  { %v24_v1 = vld [vmem:[%s326_s1 + $0x18] sm:$0xff]  ;;  %80 = vperm.xlu1 %219, %v62_v0   ;;  %221 = vset.pattern.permute.xlu2 %v253_v2 }
   0x3   :  { %43 = vperm.xlu0 %218, %v24_v1  }
   0x4   :  { %10 = vsyncpa [#allocation3], 0  ;;  %33 = vperm.xlu2 %221, %v22_v3   ;;  %v23_v4 = vld [vmem:[%s326_s1 + $0x10] sm:$0xff]  ;;  %v254_v6 = vmov 1   ;;  %v21_v7 = vld [vmem:[%s326_s1] sm:$0xff]  ;;  %vm145_vm0 = vcmask 261120  }
   0x5   :  { %v61_v5 = vld [vmem:[%s327_s2 + $0x10] sm:$0xff]  ;;  %v60_v8 = vld [vmem:[%s327_s2 + $0x8] sm:$0xff]  ;;  %v59_v9 = vld [vmem:[%s327_s2] sm:$0xff]  ;;  %s255_s13 = smov [#allocation2]   ;;  %s203_s17 = sshll.u32 %s330_s5, 4  ;;  %vm192_vm1 = vcmask 1041408   ;;  %s204_s17 = int_to_ptr.hbm [resolvable:$true] %s203_s17 }
   0x6   :  { %v25_v11 = vld [vmem:[%s325_s0] ss:$2 sm:$0x3]  ;;  %v212_v16 = vld [vmem:[%s325_s0 + $0x1] ss:$2 sm:$0x3] }
   0x7   :  { %v47_v14 = vperm.slane %v25_v11, 0  ;;  %v48_v15 = vperm.slane %v25_v11, 1  ;;  %v139_v17 = vld [vmem:[%s329_s4] sm:$0x3]  ;;  %v110_v20 = vperm.slane %v212_v16, 0  ;;  %v111_v21 = vperm.slane %v212_v16, 1 }
   0x8   :  { %s201_s14 = sshll.u32 %s255_s13, 4  ;;  %s202_s14 = int_to_ptr.vmem [resolvable:$true] %s201_s14 }
   0xa   :  { %220 = vset.pattern.permute.xlu1 %v254_v6 }
   0xb   :  { %38 = vperm.xlu0 %218, %v23_v4   ;;  %106 = vperm.xlu1 %220, %v24_v1  }
   0xc   :  { %75 = vperm.xlu2 %221, %v61_v5   ;;  %v138_v5 = vld [vmem:[%s328_s3] sm:$0x3] }
  0x13   :  { %222 = vset.pattern.permute.xlu0 %v254_v6  ;;  %223 = vset.pattern.permute.xlu1 %v253_v2 }
  0x14   :  { %102 = vperm.xlu0 %222, %v23_v4   ;;  %28 = vperm.xlu1 %223, %v21_v7  }
  0x15   :  { %70 = vperm.xlu2 %221, %v60_v8  }
  0x1c   :  { %94 = vperm.xlu0 %222, %v21_v7   ;;  %224 = vset.pattern.permute.xlu1 %v254_v6 }
  0x1d   :  { %65 = vperm.xlu2 %221, %v59_v9   ;;  %98 = vperm.xlu1 %224, %v22_v3  }
  0x24   :  { %226 = vset.pattern.permute.xlu0 %v253_v2 }
  0x25   :  { %225 = vset.pattern.permute.xlu1 %v253_v2 }
  0x26   :  { %142 = vperm.xlu1 %225, %v139_v17  }
  0x5e   :  { %v34_v10 = vpop.permute.xlu2 %33 }
  0x5f   :  { %v53_v46 = vmul.f32 %v47_v14, %v34_v10  ;;  %v54_v47 = vmul.f32 %v48_v15, %v34_v10 }
  0x66   :  { %v76_v22 = vpop.permute.xlu2 %75 }
  0x6f   :  { %v71_v35 = vpop.permute.xlu2 %70 }
  0x70   :  { %v85_v53 = vadd.f32 %v71_v35, %v53_v46  ;;  %v86_v54 = vadd.f32 %v71_v35, %v54_v47 }
  0x74   :  { %v81_v12 = vpop.permute.xlu1 %80 }
  0x75   :  { %v44_v13 = vpop.permute.xlu0 %43 }
  0x76   :  { %v57_v18 = vmul.f32 %v47_v14, %v44_v13  ;;  %v58_v19 = vmul.f32 %v48_v15, %v44_v13 }
  0x77   :  { %v66_v55 = vpop.permute.xlu2 %65 }
  0x78   :  { %v89_v27 = vadd.f32 %v81_v12, %v57_v18  ;;  %v90_v28 = vadd.f32 %v81_v12, %v58_v19 }
  0x7d   :  { %v39_v23 = vpop.permute.xlu0 %38  ;;  %v107_v24 = vpop.permute.xlu1 %106 }
  0x7e   :  { %v120_v25 = vmul.f32 %v110_v20, %v107_v24  ;;  %v121_v26 = vmul.f32 %v111_v21, %v107_v24  ;;  %v55_v31 = vmul.f32 %v47_v14, %v39_v23  ;;  %v56_v32 = vmul.f32 %v48_v15, %v39_v23 }
  0x80   :  { %v128_v29 = vadd.f32 %v120_v25, %v89_v27  ;;  %v129_v30 = vadd.f32 %v121_v26, %v90_v28  ;;  %v87_v37 = vadd.f32 %v76_v22, %v55_v31  ;;  %v88_v38 = vadd.f32 %v76_v22, %v56_v32 }
  0x82   :  { %v136_v33 = vmax.f32 %v128_v29, 0.0  ;;  %v137_v34 = vmax.f32 %v129_v30, 0.0 }
  0x84   :  { %161 = vmatpush.msra.mxu0 %v136_v33  ;;  %181 = vmatpush.msra.mxu1 %v137_v34 }
  0x86   :  { %v103_v36 = vpop.permute.xlu0 %102  ;;  %v29_v41 = vpop.permute.xlu1 %28 }
  0x87   :  { %v118_v39 = vmul.f32 %v110_v20, %v103_v36  ;;  %v119_v40 = vmul.f32 %v111_v21, %v103_v36  ;;  %v51_v48 = vmul.f32 %v47_v14, %v29_v41  ;;  %v52_v49 = vmul.f32 %v48_v15, %v29_v41 }
  0x89   :  { %v126_v42 = vadd.f32 %v118_v39, %v87_v37  ;;  %v127_v43 = vadd.f32 %v119_v40, %v88_v38  ;;  %v83_v57 = vadd.f32 %v66_v55, %v51_v48  ;;  %v84_v58 = vadd.f32 %v66_v55, %v52_v49 }
  0x8b   :  { %v134_v44 = vmax.f32 %v126_v42, 0.0  ;;  %v135_v45 = vmax.f32 %v127_v43, 0.0 }
  0x8d   :  { %162 = vmatpush.msra.mxu0 %v134_v44  ;;  %182 = vmatpush.msra.mxu1 %v135_v45 }
  0x8e   :  { %v95_v50 = vpop.permute.xlu0 %94 }
  0x8f   :  { %v114_v51 = vmul.f32 %v110_v20, %v95_v50  ;;  %v115_v52 = vmul.f32 %v111_v21, %v95_v50  ;;  %v99_v56 = vpop.permute.xlu1 %98 }
  0x90   :  { %v116_v59 = vmul.f32 %v110_v20, %v99_v56  ;;  %v117_v60 = vmul.f32 %v111_v21, %v99_v56 }
  0x91   :  { %v122_v63 = vadd.f32 %v114_v51, %v83_v57  ;;  %v123_v0 = vadd.f32 %v115_v52, %v84_v58 }
  0x92   :  { %v124_v61 = vadd.f32 %v116_v59, %v85_v53  ;;  %v125_v62 = vadd.f32 %v117_v60, %v86_v54 }
  0x93   :  { %v130_v3 = vmax.f32 %v122_v63, 0.0  ;;  %v131_v4 = vmax.f32 %v123_v0, 0.0 }
  0x94   :  { %v132_v1 = vmax.f32 %v124_v61, 0.0  ;;  %v133_v2 = vmax.f32 %v125_v62, 0.0 }
  0x96   :  { %163 = vmatpush.msra.mxu0 %v132_v1  ;;  %183 = vmatpush.msra.mxu1 %v133_v2 }
  0x98   :  { %164 = vmatpush.msra.mxu0 %v130_v3  ;;  %184 = vmatpush.msra.mxu1 %v131_v4  ;;  %v143_v6 = vpop.permute.xlu1 %142 }
  0x99   :  { %213 = vmatmul.msk.f32.vlgmr.msra.gmra.mxu0 %vm145_vm0, %v138_v5  ;;  %214 = vmatmul.msk.f32.vlgmr.msra.gmra.mxu1 %vm145_vm0, %v138_v5 }
 0x116   :  { %v166_v7 = vpop.f32.mrf.mxu0  ;;  %v186_v8 = vpop.f32.mrf.mxu1 }
 0x117   :  { %v187_v9 = vadd.f32 %v186_v8, %v143_v6  ;;  %v167_v10 = vadd.f32 %v166_v7, %v143_v6 }
 0x119   :  { %v191_v11 = vrot.slane %v187_v9, 6 }
 0x11b   :  { %v193_v12 = vsel %vm192_vm1, %v167_v10, %v191_v11 }
 0x11c   :  { %195 = vst [vmem:[#allocation2] sm:$0xf] %v193_v12 }
 0x11d   :  { %206 = dma.vmem_to_hbm [thread:$0]  %s202_s14, 64, %s204_s17, [#allocation3]  }
 0x11e   :  { %251 = dma.done.wait [#allocation3], 64  }
 0x11f   :  { %252 = vsyncadd [#allocation3], 4294967232 }
 0x120   :  { %211 = vsyncpa [#allocation3], 1 }

</bundles_post_ra>
